<compile_context>
chip_gen: v5e
topology: v5e:2x2
jax: 0.10.0
libtpu: 0.0.40
codegen_flags: <defaults>
</compile_context>

<pallas_src>
import jax
import jax.numpy as jnp
from jax.experimental import pallas as pl
from jax.experimental.pallas import tpu as pltpu


_SQRT_HALF = 0.7071067811865476


def _erf_approx(x):
    """Abramowitz & Stegun 7.1.26 rational erf approximation (|err|<=1.5e-7).

    Built only from exp / mul / add / select plus an EUP reciprocal, so it
    lowers cleanly in Mosaic without relying on an erf primitive.
    """
    a1 = 0.254829592
    a2 = -0.284496736
    a3 = 1.421413741
    a4 = -1.453152027
    a5 = 1.061405429
    p = 0.3275911
    ax = jnp.abs(x)
    d = 1.0 + p * ax
    # Approximate reciprocal runs on the EUP (its own bundle slot); one
    # Newton-Raphson step restores ~1e-7 relative accuracy.
    t = pl.reciprocal(d, approx=True)
    t = t * (2.0 - d * t)
    poly = ((((a5 * t + a4) * t + a3) * t + a2) * t + a1) * t
    y = 1.0 - poly * jnp.exp(-ax * ax)
    return jnp.where(x < 0, -y, y)


def _gelu_exact(x):
    # nn.GELU() default: 0.5 * x * (1 + erf(x / sqrt(2)))
    return 0.5 * x * (1.0 + _erf_approx(x * _SQRT_HALF))


def _mlp_tile(x_ref, w1_ref, b1_ref, w2_ref):
    """h = gelu(x @ W1 + b1); return this hidden tile's partial of h @ W2."""
    h = jnp.dot(x_ref[...], w1_ref[...], preferred_element_type=jnp.float32)
    h = _gelu_exact(h + b1_ref[...])
    return jnp.dot(h.astype(w2_ref.dtype), w2_ref[...],
                   preferred_element_type=jnp.float32)


def _gpt2_mlp_kernel_scratch_acc(x_ref, w1_ref, b1_ref, w2_ref, b2_ref,
                                 o_ref, acc_ref):
    """Generic-dtype output: accumulate in f32 VMEM scratch, store once."""
    j = pl.program_id(1)

    @pl.when(j == 0)
    def _():
        acc_ref[...] = jnp.zeros_like(acc_ref)

    acc_ref[...] += _mlp_tile(x_ref, w1_ref, b1_ref, w2_ref)

    @pl.when(j == pl.num_programs(1) - 1)
    def _():
        o_ref[...] = (acc_ref[...] + b2_ref[...]).astype(o_ref.dtype)


def _gpt2_mlp_kernel_f32_out(x_ref, w1_ref, b1_ref, w2_ref, b2_ref, o_ref):
    """float32 output: o_ref's block index is constant across the reduction
    axis, so it stays resident in VMEM -- accumulate directly into it and skip
    the separate scratch accumulator."""
    j = pl.program_id(1)
    partial = _mlp_tile(x_ref, w1_ref, b1_ref, w2_ref)

    @pl.when(j == 0)
    def _():
        o_ref[...] = partial + b2_ref[...]

    @pl.when(j > 0)
    def _():
        o_ref[...] += partial


def _round_up(x, m):
    return ((x + m - 1) // m) * m


def _cdiv(a, b):
    return -(-a // b)


def _vmem_capacity_bytes():
    """Physical VMEM of the current TPU generation (conservative fallback)."""
    try:
        cap = getattr(pltpu.get_tpu_info(), "vmem_capacity_bytes", None)
        if cap:
            return int(cap)
    except Exception:
        pass
    return 64 << 20  # v7x per-TensorCore VMEM; safe lower bound everywhere


def _vmem_usage_bytes(bm, bh, E, itemsize, out_itemsize, acc_bytes):
    """Estimated VMEM footprint of one grid step (double-buffered blocks)."""
    return (2 * bm * E * itemsize                 # x row tile
            + 2 * (E * bh + bh * E) * itemsize    # W1 col tile + W2 row tile
            + 2 * 8 * (bh + E) * itemsize         # biases (sublane-padded)
            + 2 * bm * E * out_itemsize           # output tile
            + bm * E * acc_bytes)                 # f32 scratch accumulator


def _pick_tiles(M, E, H, itemsize, out_itemsize, acc_bytes, vmem_budget,
                block_m, block_h):
    """Pick (bm, bh): bm multiple of 8; bh divides H (lane-aligned or == H)."""
    m8 = _round_up(max(M, 1), 8)

    # ---- row tile: as large as possible (sets arithmetic intensity vs. the
    # streamed weights); keep >= 2 tiles when there is plenty of work so the
    # "parallel" grid axis can shard across both TensorCores on v7x.
    bm = min(_round_up(block_m, 8), m8)
    if m8 >= 1024 and _cdiv(m8, bm) < 2:
        bm = max(512, _round_up(_cdiv(m8, 2), 256))
    bm_cands = [bm]
    while bm_cands[-1] > 256:
        bm_cands.append(max(256, _round_up(bm_cands[-1] // 2, 8)))

    # ---- hidden (reduction) tile: prefer bh == H (weights fully resident in
    # VMEM -> DMA'd from HBM exactly once for the whole kernel), otherwise the
    # largest lane-aligned divisor of H that fits the VMEM budget.
    aligned = sorted((d for d in range(128, H, 128) if H % d == 0),
                     reverse=True)
    if block_h is None or block_h >= H:
        bh_cands = [H] + aligned
    else:
        capped = [d for d in aligned if d <= block_h]
        rest = [d for d in aligned if d > block_h]
        bh_cands = capped + [H] + rest
    if not bh_cands:
        bh_cands = [H]

    for cur_bm in bm_cands:
        for cur_bh in bh_cands:
            if (_vmem_usage_bytes(cur_bm, cur_bh, E, itemsize, out_itemsize,
                                  acc_bytes) <= vmem_budget):
                return cur_bm, cur_bh
    # Nothing fits the budget (degenerate shapes): smallest candidates.
    return bm_cands[-1], bh_cands[-1]


def gpt2_mlp(hidden_states, w_fc, b_fc, w_proj, b_proj, *,
             block_m=1024, block_h=None, if_train=False):
    """Fused GPT2MLP forward.

    hidden_states: (..., E)
    w_fc:   (E, H), b_fc: (H,)     -- c_fc applied as x @ W + b (torch weight.T)
    w_proj: (H, E), b_proj: (E,)   -- c_proj applied as h @ W + b
    block_m: requested row tile (tokens); auto-clamped to the VMEM budget.
    block_h: requested hidden-reduction tile; None = auto (prefer weights
             fully resident, i.e. bh == H, whenever they fit VMEM).
    """
    if if_train:
        # TODO(synk): training-mode dropout (resid_pdrop) not implemented; it
        # would use pltpu.prng_seed + pltpu.prng_random_bits for the mask.
        raise NotImplementedError("training-mode dropout not implemented")

    E = hidden_states.shape[-1]
    H = w_fc.shape[-1]
    assert w_fc.shape == (E, H)
    assert b_fc.shape == (H,)
    assert w_proj.shape == (H, E)
    assert b_proj.shape == (E,)

    dtype = hidden_states.dtype
    x2 = hidden_states.reshape(-1, E)
    M = x2.shape[0]

    itemsize = jnp.dtype(dtype).itemsize
    # float32 outputs accumulate directly into the resident output block (no
    # scratch); other dtypes need an f32 VMEM scratch accumulator.
    f32_out = (dtype == jnp.float32)
    acc_bytes = 0 if f32_out else 4

    vmem_cap = _vmem_capacity_bytes()
    vmem_budget = max(vmem_cap - (8 << 20), 16 << 20)  # leave Mosaic headroom

    bm, bh = _pick_tiles(M, E, H, itemsize, itemsize, acc_bytes, vmem_budget,
                         block_m, block_h)

    Mp = _round_up(M, bm)
    if Mp != M:
        x2 = jnp.pad(x2, ((0, Mp - M), (0, 0)))

    grid = (Mp // bm, H // bh)
    b_fc2 = b_fc.reshape(1, H)
    b_proj2 = b_proj.reshape(1, E)

    est = _vmem_usage_bytes(bm, bh, E, itemsize, itemsize, acc_bytes)
    vmem_limit = int(min(max(est + (4 << 20), 32 << 20), vmem_budget))

    if f32_out:
        kernel = _gpt2_mlp_kernel_f32_out
        scratch_shapes = []
    else:
        kernel = _gpt2_mlp_kernel_scratch_acc
        scratch_shapes = [pltpu.VMEM((bm, E), jnp.float32)]

    out = pl.pallas_call(
        kernel,
        out_shape=jax.ShapeDtypeStruct((Mp, E), dtype),
        grid_spec=pltpu.PrefetchScalarGridSpec(
            num_scalar_prefetch=0,
            grid=grid,
            in_specs=[
                pl.BlockSpec((bm, E), lambda i, j: (i, 0)),   # x row tile
                pl.BlockSpec((E, bh), lambda i, j: (0, j)),   # W1 col tile
                pl.BlockSpec((1, bh), lambda i, j: (0, j)),   # b1 tile
                pl.BlockSpec((bh, E), lambda i, j: (j, 0)),   # W2 row tile
                pl.BlockSpec((1, E), lambda i, j: (0, 0)),    # b2
            ],
            out_specs=pl.BlockSpec((bm, E), lambda i, j: (i, 0)),
            scratch_shapes=scratch_shapes,
        ),
        compiler_params=pltpu.CompilerParams(
            dimension_semantics=("parallel", "arbitrary"),
            vmem_limit_bytes=vmem_limit,
        ),
    )(x2, w_fc, b_fc2, w_proj, b_proj2)

    if Mp != M:
        out = out[:M]
    return out.reshape(hidden_states.shape)


def _reference(x, w_fc, b_fc, w_proj, b_proj):
    # Pure-JAX reference with exact (erf) GELU and HIGHEST-precision matmuls.
    h = jnp.einsum("bse,eh->bsh", x, w_fc,
                   precision=jax.lax.Precision.HIGHEST) + b_fc
    h = 0.5 * h * (1.0 + jax.scipy.special.erf(h * _SQRT_HALF))
    return jnp.einsum("bsh,he->bse", h, w_proj,
                      precision=jax.lax.Precision.HIGHEST) + b_proj


if __name__ == "__main__":
    # Small shapes consistent with the module: (batch, seq, embed_dim) tokens,
    # hidden = n_hidden_size.
    batch, seq = 2, 8
    embed_dim, hidden = 128, 512

    key = jax.random.PRNGKey(0)
    kx, k1, k2, k3, k4 = jax.random.split(key, 5)

    x = jax.random.normal(kx, (batch, seq, embed_dim), dtype=jnp.float32)
    w_fc = jax.random.normal(k1, (embed_dim, hidden), dtype=jnp.float32) / (embed_dim ** 0.5)
    b_fc = 0.02 * jax.random.normal(k2, (hidden,), dtype=jnp.float32)
    w_proj = jax.random.normal(k3, (hidden, embed_dim), dtype=jnp.float32) / (hidden ** 0.5)
    b_proj = 0.02 * jax.random.normal(k4, (embed_dim,), dtype=jnp.float32)

    ref = _reference(x, w_fc, b_fc, w_proj, b_proj)

    # 1) Default auto-tiling: weights resident (bh == H, single reduction
    #    step), f32 output accumulated directly in o_ref (no scratch).
    out = gpt2_mlp(x, w_fc, b_fc, w_proj, b_proj)
    out = jax.block_until_ready(out)
    assert out.shape == x.shape and out.dtype == x.dtype
    err = float(jnp.max(jnp.abs(out - ref)))
    assert jnp.allclose(out, ref, atol=1e-3, rtol=1e-3), f"default path max err {err}"

    # 2) Forced small tiles: exercises multi-step reduction (grid axis 1 > 1)
    #    and row tiling (grid axis 0 > 1) on the f32 direct-accumulation path.
    out2 = gpt2_mlp(x, w_fc, b_fc, w_proj, b_proj, block_m=8, block_h=256)
    out2 = jax.block_until_ready(out2)
    err2 = float(jnp.max(jnp.abs(out2 - ref)))
    assert jnp.allclose(out2, ref, atol=1e-3, rtol=1e-3), f"tiled path max err {err2}"

    # 3) bf16 inputs with forced hidden tiling: exercises the f32 VMEM scratch
    #    accumulator kernel (non-f32 output, mixed-precision MXU).
    out3 = gpt2_mlp(x.astype(jnp.bfloat16),
                    w_fc.astype(jnp.bfloat16), b_fc.astype(jnp.bfloat16),
                    w_proj.astype(jnp.bfloat16), b_proj.astype(jnp.bfloat16),
                    block_m=16, block_h=256)
    out3 = jax.block_until_ready(out3)
    assert out3.shape == x.shape and out3.dtype == jnp.bfloat16
    err3 = float(jnp.max(jnp.abs(out3.astype(jnp.float32) - ref)))
    assert err3 < 0.1, f"bf16 path max err {err3}"

    print("KERNEL_OK")
</pallas_src>

<mosaic_0001>
module attributes {stable_mosaic.version = 11 : i64} {
  func.func @_gpt2_mlp_kernel_f32_out(%arg0: i32, %arg1: i32, %arg2: memref<16x128xf32, #tpu.memory_space<vmem>>, %arg3: memref<128x512xf32, #tpu.memory_space<vmem>>, %arg4: memref<1x512xf32, #tpu.memory_space<vmem>>, %arg5: memref<512x128xf32, #tpu.memory_space<vmem>>, %arg6: memref<1x128xf32, #tpu.memory_space<vmem>>, %arg7: memref<16x128xf32, #tpu.memory_space<vmem>>) attributes {dimension_semantics = [#tpu.dimension_semantics<parallel>, #tpu.dimension_semantics<arbitrary>], iteration_bounds = array<i64: 1, 1>, scalar_prefetch = 0 : i64, scratch_operands = 0 : i64, tpu.core_type = #tpu.core_type<tc>, window_params = [{transform_indices = @transform_0, window_bounds = array<i64: 16, 128>}, {transform_indices = @transform_1, window_bounds = array<i64: 128, 512>}, {transform_indices = @transform_2, window_bounds = array<i64: 1, 512>}, {transform_indices = @transform_3, window_bounds = array<i64: 512, 128>}, {pipeline_mode = #tpu.pipeline_mode<synchronous>, transform_indices = @transform_4, window_bounds = array<i64: 1, 128>}, {transform_indices = @transform_5, window_bounds = array<i64: 16, 128>}]} {
    %c0 = arith.constant 0 : index
    %c0_0 = arith.constant 0 : index
    %0 = vector.load %arg2[%c0, %c0_0] : memref<16x128xf32, #tpu.memory_space<vmem>>, vector<16x128xf32>
    %c0_1 = arith.constant 0 : index
    %c0_2 = arith.constant 0 : index
    %1 = vector.load %arg3[%c0_1, %c0_2] : memref<128x512xf32, #tpu.memory_space<vmem>>, vector<128x512xf32>
    %cst = arith.constant dense<0.000000e+00> : vector<16x512xf32>
    %2 = tpu.matmul %0, %1, %cst {dimension_numbers = #tpu.dot_dimension_numbers<[1], [0], [0], [1], [0, 0, 1, 1], [], []>} : vector<16x128xf32>, vector<128x512xf32>, vector<16x512xf32> -> vector<16x512xf32>
    %c0_3 = arith.constant 0 : index
    %c0_4 = arith.constant 0 : index
    %3 = vector.load %arg4[%c0_3, %c0_4] : memref<1x512xf32, #tpu.memory_space<vmem>>, vector<1x512xf32>
    %4 = vector.broadcast %3 : vector<1x512xf32> to vector<16x512xf32>
    %5 = arith.addf %2, %4 : vector<16x512xf32>
    %cst_5 = arith.constant 5.000000e-01 : f32
    %6 = vector.broadcast %cst_5 : f32 to vector<16x512xf32>
    %7 = arith.mulf %6, %5 : vector<16x512xf32>
    %cst_6 = arith.constant 0.707106769 : f32
    %8 = vector.broadcast %cst_6 : f32 to vector<16x512xf32>
    %9 = arith.mulf %5, %8 : vector<16x512xf32>
    %10 = math.absf %9 : vector<16x512xf32>
    %cst_7 = arith.constant 0.327591091 : f32
    %11 = vector.broadcast %cst_7 : f32 to vector<16x512xf32>
    %12 = arith.mulf %11, %10 : vector<16x512xf32>
    %cst_8 = arith.constant 1.000000e+00 : f32
    %13 = vector.broadcast %cst_8 : f32 to vector<16x512xf32>
    %14 = arith.addf %13, %12 : vector<16x512xf32>
    %15 = tpu.reciprocal %14 {approx = true} : vector<16x512xf32> -> vector<16x512xf32>
    %16 = arith.mulf %14, %15 : vector<16x512xf32>
    %cst_9 = arith.constant 2.000000e+00 : f32
    %17 = vector.broadcast %cst_9 : f32 to vector<16x512xf32>
    %18 = arith.subf %17, %16 : vector<16x512xf32>
    %19 = arith.mulf %15, %18 : vector<16x512xf32>
    %cst_10 = arith.constant 1.06140542 : f32
    %20 = vector.broadcast %cst_10 : f32 to vector<16x512xf32>
    %21 = arith.mulf %20, %19 : vector<16x512xf32>
    %cst_11 = arith.constant -1.45315206 : f32
    %22 = vector.broadcast %cst_11 : f32 to vector<16x512xf32>
    %23 = arith.addf %21, %22 : vector<16x512xf32>
    %24 = arith.mulf %23, %19 : vector<16x512xf32>
    %cst_12 = arith.constant 1.42141378 : f32
    %25 = vector.broadcast %cst_12 : f32 to vector<16x512xf32>
    %26 = arith.addf %24, %25 : vector<16x512xf32>
    %27 = arith.mulf %26, %19 : vector<16x512xf32>
    %cst_13 = arith.constant -0.284496725 : f32
    %28 = vector.broadcast %cst_13 : f32 to vector<16x512xf32>
    %29 = arith.addf %27, %28 : vector<16x512xf32>
    %30 = arith.mulf %29, %19 : vector<16x512xf32>
    %cst_14 = arith.constant 0.254829586 : f32
    %31 = vector.broadcast %cst_14 : f32 to vector<16x512xf32>
    %32 = arith.addf %30, %31 : vector<16x512xf32>
    %33 = arith.mulf %32, %19 : vector<16x512xf32>
    %cst_15 = arith.constant 0.000000e+00 : f32
    %34 = vector.broadcast %cst_15 : f32 to vector<16x512xf32>
    %35 = arith.subf %34, %10 : vector<16x512xf32>
    %36 = arith.mulf %35, %10 : vector<16x512xf32>
    %37 = math.exp %36 : vector<16x512xf32>
    %38 = arith.mulf %33, %37 : vector<16x512xf32>
    %cst_16 = arith.constant 1.000000e+00 : f32
    %39 = vector.broadcast %cst_16 : f32 to vector<16x512xf32>
    %40 = arith.subf %39, %38 : vector<16x512xf32>
    %cst_17 = arith.constant 0.000000e+00 : f32
    %41 = vector.broadcast %cst_17 : f32 to vector<16x512xf32>
    %42 = arith.cmpf olt, %9, %41 : vector<16x512xf32>
    %cst_18 = arith.constant 0.000000e+00 : f32
    %43 = vector.broadcast %cst_18 : f32 to vector<16x512xf32>
    %44 = arith.subf %43, %40 : vector<16x512xf32>
    %45 = arith.select %42, %44, %40 : vector<16x512xi1>, vector<16x512xf32>
    %cst_19 = arith.constant 1.000000e+00 : f32
    %46 = vector.broadcast %cst_19 : f32 to vector<16x512xf32>
    %47 = arith.addf %46, %45 : vector<16x512xf32>
    %48 = arith.mulf %7, %47 : vector<16x512xf32>
    %c0_20 = arith.constant 0 : index
    %c0_21 = arith.constant 0 : index
    %49 = vector.load %arg5[%c0_20, %c0_21] : memref<512x128xf32, #tpu.memory_space<vmem>>, vector<512x128xf32>
    %cst_22 = arith.constant dense<0.000000e+00> : vector<16x128xf32>
    %50 = tpu.matmul %48, %49, %cst_22 {dimension_numbers = #tpu.dot_dimension_numbers<[1], [0], [0], [1], [0, 0, 1, 1], [], []>} : vector<16x512xf32>, vector<512x128xf32>, vector<16x128xf32> -> vector<16x128xf32>
    %c0_i32 = arith.constant 0 : i32
    %51 = arith.cmpi eq, %arg1, %c0_i32 : i32
    %52 = arith.extui %51 : i1 to i32
    %c0_i32_23 = arith.constant 0 : i32
    %53 = arith.cmpi ne, %52, %c0_i32_23 : i32
    scf.if %53 {
      %c0_26 = arith.constant 0 : index
      %c0_27 = arith.constant 0 : index
      %57 = vector.load %arg6[%c0_26, %c0_27] : memref<1x128xf32, #tpu.memory_space<vmem>>, vector<1x128xf32>
      %58 = vector.broadcast %57 : vector<1x128xf32> to vector<16x128xf32>
      %59 = arith.addf %50, %58 : vector<16x128xf32>
      %c0_28 = arith.constant 0 : index
      %c0_29 = arith.constant 0 : index
      %60 = vector.load %arg7[%c0_28, %c0_29] : memref<16x128xf32, #tpu.memory_space<vmem>>, vector<16x128xf32>
      tpu.vector_store %arg7[%c0_28, %c0_29], %59 {strides = array<i32>} : memref<16x128xf32, #tpu.memory_space<vmem>>, vector<16x128xf32>,
    } else {
    }
    %c0_i32_24 = arith.constant 0 : i32
    %54 = arith.cmpi sgt, %arg1, %c0_i32_24 : i32
    %55 = arith.extui %54 : i1 to i32
    %c0_i32_25 = arith.constant 0 : i32
    %56 = arith.cmpi ne, %55, %c0_i32_25 : i32
    scf.if %56 {
      %c0_26 = arith.constant 0 : index
      %c0_27 = arith.constant 0 : index
      %57 = vector.load %arg7[%c0_26, %c0_27] : memref<16x128xf32, #tpu.memory_space<vmem>>, vector<16x128xf32>
      %58 = arith.addf %57, %50 : vector<16x128xf32>
      %c0_28 = arith.constant 0 : index
      %c0_29 = arith.constant 0 : index
      %59 = vector.load %arg7[%c0_28, %c0_29] : memref<16x128xf32, #tpu.memory_space<vmem>>, vector<16x128xf32>
      tpu.vector_store %arg7[%c0_28, %c0_29], %58 {strides = array<i32>} : memref<16x128xf32, #tpu.memory_space<vmem>>, vector<16x128xf32>,
    } else {
    }
    return
  }
  func.func @transform_0(%arg0: i32, %arg1: i32) -> (i32, i32) {
    %c0_i32 = arith.constant 0 : i32
    %c0_i32_0 = arith.constant 0 : i32
    return %arg0, %c0_i32 : i32, i32
  }
  func.func @transform_1(%arg0: i32, %arg1: i32) -> (i32, i32) {
    %c0_i32 = arith.constant 0 : i32
    %c0_i32_0 = arith.constant 0 : i32
    return %c0_i32, %arg1 : i32, i32
  }
  func.func @transform_2(%arg0: i32, %arg1: i32) -> (i32, i32) {
    %c0_i32 = arith.constant 0 : i32
    %c0_i32_0 = arith.constant 0 : i32
    return %c0_i32, %arg1 : i32, i32
  }
  func.func @transform_3(%arg0: i32, %arg1: i32) -> (i32, i32) {
    %c0_i32 = arith.constant 0 : i32
    %c0_i32_0 = arith.constant 0 : i32
    return %arg1, %c0_i32 : i32, i32
  }
  func.func @transform_4(%arg0: i32, %arg1: i32) -> (i32, i32) {
    %c0_i32 = arith.constant 0 : i32
    %c0_i32_0 = arith.constant 0 : i32
    %c0_i32_1 = arith.constant 0 : i32
    return %c0_i32, %c0_i32_0 : i32, i32
  }
  func.func @transform_5(%arg0: i32, %arg1: i32) -> (i32, i32) {
    %c0_i32 = arith.constant 0 : i32
    %c0_i32_0 = arith.constant 0 : i32
    return %arg0, %c0_i32 : i32, i32
  }
}

</mosaic_0001>

<bundles_post_ra>
// kernel: tpu_custom_call.1
= control target key start
LH: loop header
LB: loop body
LE: loop exit
PB: predicated region body
PF: predicated region fallthrough
CT: control target
= control target key end

     0   :  { %10 = vsyncpa [#allocation3], 0  ;;  %s1163_s0 = inlined_call_operand.hbm [shape: f32[16,128], index: 0, kind: input, shape index: {}]   ;;  %s1164_s1 = inlined_call_operand.hbm [shape: f32[128,512], index: 1, kind: input, shape index: {}]   ;;  %s1165_s2 = inlined_call_operand.hbm [shape: f32[1,512], index: 2, kind: input, shape index: {}]   ;;  %s1166_s3 = inlined_call_operand.hbm [shape: f32[512,128], index: 3, kind: input, shape index: {}]   ;;  %s1167_s4 = inlined_call_operand.vmem [shape: f32[1,128], index: 4, kind: input, shape index: {}]   ;;  %s1168_s5 = inlined_call_operand.hbm [shape: f32[16,128], index: 5, kind: output, shape index: {}]  }
   0x1   :  { %11 = vsyncpa [#allocation6], 0 }
   0x2   :  { %12 = vsyncpa [#allocation9], 0  ;;  %s31_s20 = sshll.u32 %s1164_s1, 4  ;;  %s32_s20 = int_to_ptr.hbm [resolvable:$true] %s31_s20 }
   0x3   :  { %13 = vsyncpa [#allocation4], 0  ;;  %s851_s21 = smov [#allocation5]   ;;  %s18_s25 = sshll.u32 %s1163_s0, 4  ;;  %s19_s25 = int_to_ptr.hbm [resolvable:$true] %s18_s25 }
   0x4   :  { %s33_s22 = sshll.u32 %s851_s21, 4  ;;  %s852_s26 = smov 512   ;;  %s34_s22 = int_to_ptr.vmem [resolvable:$true] %s33_s22 }
   0x5   :  { %s853_s27 = smov 32   ;;  %s854_s28 = smov [#allocation2]  }
   0x6   :  { %39 = dma.hbm_to_vmem [thread:$0]  %s32_s20, 8192, %s34_s22, [#allocation6], %s852_s26, %s852_s26, %s853_s27  }
   0x7   :  { %s20_s29 = sshll.u32 %s854_s28, 4  ;;  %s855_s30 = smov 128   ;;  %s21_s29 = int_to_ptr.vmem [resolvable:$true] %s20_s29 }
   0x8   :  { %s856_s6 = smov 8   ;;  %s45_s8 = sshll.u32 %s1165_s2, 4  ;;  %s46_s8 = int_to_ptr.hbm [resolvable:$true] %s45_s8 }
   0x9   :  { %26 = dma.hbm_to_vmem [thread:$0]  %s19_s25, 256, %s21_s29, [#allocation3], %s855_s30, %s855_s30, %s856_s6  }
   0xa   :  { %s857_s9 = smov [#allocation7]   ;;  %s55_s12 = sshll.u32 %s1166_s3, 4  ;;  %s56_s12 = int_to_ptr.hbm [resolvable:$true] %s55_s12 }
   0xb   :  { %s47_s0 = sshll.u32 %s857_s9, 4  ;;  %s858_s13 = smov [#allocation8]   ;;  %s48_s0 = int_to_ptr.vmem [resolvable:$true] %s47_s0 }
   0xc   :  { %50 = dma.hbm_to_vmem [thread:$0]  %s46_s8, 64, %s48_s0, [#allocation6]  }
   0xd   :  { %s57_s14 = sshll.u32 %s858_s13, 4  ;;  %s58_s14 = int_to_ptr.vmem [resolvable:$true] %s57_s14 }
   0xe   :  { %63 = dma.hbm_to_vmem [thread:$0]  %s56_s12, 8192, %s58_s14, [#allocation9], %s855_s30, %s855_s30, %s856_s6  }
   0xf   :  { %843 = dma.done.wait [#allocation3], 256  }
  0x10   :  { %844 = vsyncadd [#allocation3], 4294967040 }
  0x11   :  { %845 = dma.done.wait [#allocation6], 8256  }
  0x12   :  { %846 = vsyncadd [#allocation6], 4294959040 }
  0x13   :  { %847 = dma.done.wait [#allocation9], 8192  }
  0x14   :  { %848 = vsyncadd [#allocation9], 4294959104  ;;  %v144_v0 = vld [vmem:[#allocation5 + $0x1e0] sm:$0xff]  ;;  %v145_v1 = vld [vmem:[#allocation5 + $0x1e8] sm:$0xff]  ;;  %s859_s15 = smov [#allocation10]   ;;  %s666_s19 = sshll.u32 %s1168_s5, 4  ;;  %s667_s19 = int_to_ptr.hbm [resolvable:$true] %s666_s19 }
  0x15   :  { %v146_v2 = vld [vmem:[#allocation5 + $0x1f0] sm:$0xff]  ;;  %158 = vmatpush.msra.mxu0 %v144_v0  ;;  %181 = vmatpush.msra.mxu1 %v145_v1  ;;  %v147_v3 = vld [vmem:[#allocation5 + $0x1f8] sm:$0xff]  ;;  %v140_v4 = vld [vmem:[#allocation5 + $0x1c0] sm:$0xff]  ;;  %s664_s16 = sshll.u32 %s859_s15, 4  ;;  %s665_s16 = int_to_ptr.vmem [resolvable:$true] %s664_s16 }
  0x16   :  { %v141_v5 = vld [vmem:[#allocation5 + $0x1c8] sm:$0xff]  ;;  %204 = vmatpush.msra.mxu2 %v146_v2  ;;  %227 = vmatpush.msra.mxu3 %v147_v3  ;;  %v142_v6 = vld [vmem:[#allocation5 + $0x1d0] sm:$0xff]  ;;  %v143_v7 = vld [vmem:[#allocation5 + $0x1d8] sm:$0xff] }
  0x17   :  { %v136_v8 = vld [vmem:[#allocation5 + $0x1a0] sm:$0xff]  ;;  %159 = vmatpush.msra.mxu0 %v140_v4  ;;  %182 = vmatpush.msra.mxu1 %v141_v5  ;;  %v137_v9 = vld [vmem:[#allocation5 + $0x1a8] sm:$0xff]  ;;  %v138_v10 = vld [vmem:[#allocation5 + $0x1b0] sm:$0xff] }
  0x18   :  { %v139_v11 = vld [vmem:[#allocation5 + $0x1b8] sm:$0xff]  ;;  %205 = vmatpush.msra.mxu2 %v142_v6  ;;  %228 = vmatpush.msra.mxu3 %v143_v7  ;;  %v132_v12 = vld [vmem:[#allocation5 + $0x180] sm:$0xff]  ;;  %v133_v13 = vld [vmem:[#allocation5 + $0x188] sm:$0xff] }
  0x19   :  { %160 = vmatpush.msra.mxu0 %v136_v8  ;;  %183 = vmatpush.msra.mxu1 %v137_v9  ;;  %v134_v14 = vld [vmem:[#allocation5 + $0x190] sm:$0xff]  ;;  %v135_v15 = vld [vmem:[#allocation5 + $0x198] sm:$0xff]  ;;  %v128_v16 = vld [vmem:[#allocation5 + $0x160] sm:$0xff] }
  0x1a   :  { %206 = vmatpush.msra.mxu2 %v138_v10  ;;  %229 = vmatpush.msra.mxu3 %v139_v11  ;;  %v129_v17 = vld [vmem:[#allocation5 + $0x168] sm:$0xff]  ;;  %v130_v18 = vld [vmem:[#allocation5 + $0x170] sm:$0xff]  ;;  %v131_v19 = vld [vmem:[#allocation5 + $0x178] sm:$0xff] }
  0x1b   :  { %161 = vmatpush.msra.mxu0 %v132_v12  ;;  %184 = vmatpush.msra.mxu1 %v133_v13  ;;  %v124_v20 = vld [vmem:[#allocation5 + $0x140] sm:$0xff]  ;;  %v125_v21 = vld [vmem:[#allocation5 + $0x148] sm:$0xff]  ;;  %v126_v22 = vld [vmem:[#allocation5 + $0x150] sm:$0xff] }
  0x1c   :  { %207 = vmatpush.msra.mxu2 %v134_v14  ;;  %230 = vmatpush.msra.mxu3 %v135_v15  ;;  %v127_v23 = vld [vmem:[#allocation5 + $0x158] sm:$0xff]  ;;  %v120_v24 = vld [vmem:[#allocation5 + $0x120] sm:$0xff]  ;;  %v121_v25 = vld [vmem:[#allocation5 + $0x128] sm:$0xff] }
  0x1d   :  { %162 = vmatpush.msra.mxu0 %v128_v16  ;;  %185 = vmatpush.msra.mxu1 %v129_v17  ;;  %v122_v26 = vld [vmem:[#allocation5 + $0x130] sm:$0xff]  ;;  %v123_v27 = vld [vmem:[#allocation5 + $0x138] sm:$0xff]  ;;  %v116_v28 = vld [vmem:[#allocation5 + $0x100] sm:$0xff] }
  0x1e   :  { %208 = vmatpush.msra.mxu2 %v130_v18  ;;  %231 = vmatpush.msra.mxu3 %v131_v19  ;;  %v117_v29 = vld [vmem:[#allocation5 + $0x108] sm:$0xff]  ;;  %v118_v30 = vld [vmem:[#allocation5 + $0x110] sm:$0xff]  ;;  %v119_v31 = vld [vmem:[#allocation5 + $0x118] sm:$0xff] }
  0x1f   :  { %163 = vmatpush.msra.mxu0 %v124_v20  ;;  %186 = vmatpush.msra.mxu1 %v125_v21  ;;  %v112_v32 = vld [vmem:[#allocation5 + $0xe0] sm:$0xff]  ;;  %v113_v33 = vld [vmem:[#allocation5 + $0xe8] sm:$0xff]  ;;  %v114_v34 = vld [vmem:[#allocation5 + $0xf0] sm:$0xff] }
  0x20   :  { %209 = vmatpush.msra.mxu2 %v126_v22  ;;  %232 = vmatpush.msra.mxu3 %v127_v23  ;;  %v115_v35 = vld [vmem:[#allocation5 + $0xf8] sm:$0xff]  ;;  %v108_v36 = vld [vmem:[#allocation5 + $0xc0] sm:$0xff]  ;;  %v109_v37 = vld [vmem:[#allocation5 + $0xc8] sm:$0xff] }
  0x21   :  { %164 = vmatpush.msra.mxu0 %v120_v24  ;;  %187 = vmatpush.msra.mxu1 %v121_v25  ;;  %v110_v38 = vld [vmem:[#allocation5 + $0xd0] sm:$0xff]  ;;  %v111_v39 = vld [vmem:[#allocation5 + $0xd8] sm:$0xff]  ;;  %v104_v40 = vld [vmem:[#allocation5 + $0xa0] sm:$0xff] }
  0x22   :  { %210 = vmatpush.msra.mxu2 %v122_v26  ;;  %233 = vmatpush.msra.mxu3 %v123_v27  ;;  %v105_v41 = vld [vmem:[#allocation5 + $0xa8] sm:$0xff]  ;;  %v106_v42 = vld [vmem:[#allocation5 + $0xb0] sm:$0xff]  ;;  %v107_v43 = vld [vmem:[#allocation5 + $0xb8] sm:$0xff] }
  0x23   :  { %165 = vmatpush.msra.mxu0 %v116_v28  ;;  %188 = vmatpush.msra.mxu1 %v117_v29  ;;  %v100_v44 = vld [vmem:[#allocation5 + $0x80] sm:$0xff]  ;;  %v101_v45 = vld [vmem:[#allocation5 + $0x88] sm:$0xff]  ;;  %v102_v46 = vld [vmem:[#allocation5 + $0x90] sm:$0xff] }
  0x24   :  { %211 = vmatpush.msra.mxu2 %v118_v30  ;;  %234 = vmatpush.msra.mxu3 %v119_v31  ;;  %v103_v47 = vld [vmem:[#allocation5 + $0x98] sm:$0xff]  ;;  %v96_v48 = vld [vmem:[#allocation5 + $0x60] sm:$0xff]  ;;  %v97_v49 = vld [vmem:[#allocation5 + $0x68] sm:$0xff] }
  0x25   :  { %166 = vmatpush.msra.mxu0 %v112_v32  ;;  %189 = vmatpush.msra.mxu1 %v113_v33  ;;  %v98_v50 = vld [vmem:[#allocation5 + $0x70] sm:$0xff]  ;;  %v99_v51 = vld [vmem:[#allocation5 + $0x78] sm:$0xff]  ;;  %v92_v52 = vld [vmem:[#allocation5 + $0x40] sm:$0xff] }
  0x26   :  { %212 = vmatpush.msra.mxu2 %v114_v34  ;;  %235 = vmatpush.msra.mxu3 %v115_v35  ;;  %v93_v53 = vld [vmem:[#allocation5 + $0x48] sm:$0xff]  ;;  %v94_v54 = vld [vmem:[#allocation5 + $0x50] sm:$0xff]  ;;  %v95_v55 = vld [vmem:[#allocation5 + $0x58] sm:$0xff] }
  0x27   :  { %167 = vmatpush.msra.mxu0 %v108_v36  ;;  %190 = vmatpush.msra.mxu1 %v109_v37  ;;  %v88_v56 = vld [vmem:[#allocation5 + $0x20] sm:$0xff]  ;;  %v89_v57 = vld [vmem:[#allocation5 + $0x28] sm:$0xff]  ;;  %v90_v58 = vld [vmem:[#allocation5 + $0x30] sm:$0xff] }
  0x28   :  { %213 = vmatpush.msra.mxu2 %v110_v38  ;;  %236 = vmatpush.msra.mxu3 %v111_v39  ;;  %v91_v59 = vld [vmem:[#allocation5 + $0x38] sm:$0xff]  ;;  %v84_v60 = vld [vmem:[#allocation5] sm:$0xff]  ;;  %v85_v61 = vld [vmem:[#allocation5 + $0x8] sm:$0xff] }
  0x29   :  { %168 = vmatpush.msra.mxu0 %v104_v40  ;;  %191 = vmatpush.msra.mxu1 %v105_v41  ;;  %v86_v62 = vld [vmem:[#allocation5 + $0x10] sm:$0xff]  ;;  %v87_v63 = vld [vmem:[#allocation5 + $0x18] sm:$0xff]  ;;  %v908_v2 = vld [vmem:[#allocation7] sm:$0xf] }
  0x2a   :  { %214 = vmatpush.msra.mxu2 %v106_v42  ;;  %237 = vmatpush.msra.mxu3 %v107_v43  ;;  %v82_v0 = vld [vmem:[#allocation2] sm:$0xff]  ;;  %v83_v1 = vld [vmem:[#allocation2 + $0x8] sm:$0xff]  ;;  %v150_v3 = vperm.slane %v908_v2, 0  ;;  %v151_v4 = vperm.slane %v908_v2, 1  ;;  %v152_v15 = vperm.slane %v908_v2, 2  ;;  %v153_v16 = vperm.slane %v908_v2, 3 }
  0x2b   :  { %169 = vmatpush.msra.mxu0 %v100_v44  ;;  %192 = vmatpush.msra.mxu1 %v101_v45  ;;  %v497_v5 = vld [vmem:[#allocation8 + $0x78] sm:$0xff]  ;;  %v496_v11 = vld [vmem:[#allocation8 + $0x70] sm:$0xff]  ;;  %v495_v17 = vld [vmem:[#allocation8 + $0x68] sm:$0xff] }
  0x2c   :  { %215 = vmatpush.msra.mxu2 %v102_v46  ;;  %238 = vmatpush.msra.mxu3 %v103_v47  ;;  %v513_v6 = vld [vmem:[#allocation8 + $0xf8] sm:$0xff]  ;;  %v512_v12 = vld [vmem:[#allocation8 + $0xf0] sm:$0xff]  ;;  %v511_v18 = vld [vmem:[#allocation8 + $0xe8] sm:$0xff] }
  0x2d   :  { %170 = vmatpush.msra.mxu0 %v96_v48  ;;  %193 = vmatpush.msra.mxu1 %v97_v49  ;;  %v494_v21 = vld [vmem:[#allocation8 + $0x60] sm:$0xff]  ;;  %v529_v23 = vld [vmem:[#allocation8 + $0x178] sm:$0xff]  ;;  %v528_v36 = vld [vmem:[#allocation8 + $0x170] sm:$0xff] }
  0x2e   :  { %216 = vmatpush.msra.mxu2 %v98_v50  ;;  %239 = vmatpush.msra.mxu3 %v99_v51  ;;  %v510_v22 = vld [vmem:[#allocation8 + $0xe0] sm:$0xff]  ;;  %v545_v31 = vld [vmem:[#allocation8 + $0x1f8] sm:$0xff]  ;;  %v544_v37 = vld [vmem:[#allocation8 + $0x1f0] sm:$0xff] }
  0x2f   :  { %171 = vmatpush.msra.mxu0 %v92_v52  ;;  %194 = vmatpush.msra.mxu1 %v93_v53  ;;  %v493_v32 = vld [vmem:[#allocation8 + $0x58] sm:$0xff]  ;;  %v492_v38 = vld [vmem:[#allocation8 + $0x50] sm:$0xff]  ;;  %v527_v43 = vld [vmem:[#allocation8 + $0x168] sm:$0xff] }
  0x30   :  { %217 = vmatpush.msra.mxu2 %v94_v54  ;;  %240 = vmatpush.msra.mxu3 %v95_v55  ;;  %v509_v33 = vld [vmem:[#allocation8 + $0xd8] sm:$0xff]  ;;  %v508_v42 = vld [vmem:[#allocation8 + $0xd0] sm:$0xff]  ;;  %v543_v47 = vld [vmem:[#allocation8 + $0x1e8] sm:$0xff] }
  0x31   :  { %172 = vmatpush.msra.mxu0 %v88_v56  ;;  %195 = vmatpush.msra.mxu1 %v89_v57  ;;  %v491_v50 = vld [vmem:[#allocation8 + $0x48] sm:$0xff]  ;;  %v526_v55 = vld [vmem:[#allocation8 + $0x160] sm:$0xff] }
  0x32   :  { %218 = vmatpush.msra.mxu2 %v90_v58  ;;  %241 = vmatpush.msra.mxu3 %v91_v59  ;;  %v507_v51 = vld [vmem:[#allocation8 + $0xc8] sm:$0xff]  ;;  %v542_v58 = vld [vmem:[#allocation8 + $0x1e0] sm:$0xff] }
  0x33   :  { %173 = vmatpush.msra.mxu0 %v84_v60  ;;  %196 = vmatpush.msra.mxu1 %v85_v61  ;;  %v490_v59 = vld [vmem:[#allocation8 + $0x40] sm:$0xff] }
  0x34   :  { %219 = vmatpush.msra.mxu2 %v86_v62  ;;  %242 = vmatpush.msra.mxu3 %v87_v63 }
  0x35   :  { %174 = vmatmul.f32.vlgmr.msra.gmra.mxu0 %v82_v0  ;;  %197 = vmatmul.f32.vlgmr.msra.gmra.mxu1 %v82_v0 }
  0x36   :  { %220 = vmatmul.f32.vlgmr.msra.gmra.mxu2 %v82_v0  ;;  %243 = vmatmul.f32.vlgmr.msra.gmra.mxu3 %v82_v0  ;;  %v506_v0 = vld [vmem:[#allocation8 + $0xc0] sm:$0xff] }
  0x37   :  { %546 = vmatpush.msrb.mxu0 %v497_v5  ;;  %569 = vmatpush.msrb.mxu1 %v513_v6 }
  0x38   :  { %592 = vmatpush.msrb.mxu2 %v529_v23  ;;  %615 = vmatpush.msrb.mxu3 %v545_v31 }
  0x39   :  { %547 = vmatpush.msrb.mxu0 %v496_v11  ;;  %570 = vmatpush.msrb.mxu1 %v512_v12  ;;  %v489_v11 = vld [vmem:[#allocation8 + $0x38] sm:$0xff] }
  0x3a   :  { %593 = vmatpush.msrb.mxu2 %v528_v36  ;;  %616 = vmatpush.msrb.mxu3 %v544_v37  ;;  %v505_v12 = vld [vmem:[#allocation8 + $0xb8] sm:$0xff]  ;;  %v503_v36 = vld [vmem:[#allocation8 + $0xa8] sm:$0xff] }
  0x3b   :  { %548 = vmatpush.msrb.mxu0 %v495_v17  ;;  %571 = vmatpush.msrb.mxu1 %v511_v18 }
  0x3c   :  { %594 = vmatpush.msrb.mxu2 %v527_v43  ;;  %617 = vmatpush.msrb.mxu3 %v543_v47  ;;  %v538_v43 = vld [vmem:[#allocation8 + $0x1c0] sm:$0xff] }
  0x3d   :  { %177 = vmatmul.f32.gmra.mxu0 %v83_v1  ;;  %200 = vmatmul.f32.gmra.mxu1 %v83_v1 }
  0x3e   :  { %223 = vmatmul.f32.gmra.mxu2 %v83_v1  ;;  %246 = vmatmul.f32.gmra.mxu3 %v83_v1  ;;  %v525_v1 = vld [vmem:[#allocation8 + $0x158] sm:$0xff] }
  0x3f   :  { %549 = vmatpush.msrb.mxu0 %v494_v21  ;;  %572 = vmatpush.msrb.mxu1 %v510_v22  ;;  %v540_v22 = vld [vmem:[#allocation8 + $0x1d0] sm:$0xff] }
  0x40   :  { %595 = vmatpush.msrb.mxu2 %v526_v55  ;;  %618 = vmatpush.msrb.mxu3 %v542_v58  ;;  %v537_v55 = vld [vmem:[#allocation8 + $0x1b8] sm:$0xff] }
  0x41   :  { %550 = vmatpush.msrb.mxu0 %v493_v32  ;;  %573 = vmatpush.msrb.mxu1 %v509_v33  ;;  %v485_v58 = vld [vmem:[#allocation8 + $0x18] sm:$0xff] }
  0x42   :  { %596 = vmatpush.msrb.mxu2 %v525_v1  ;;  %v520_v1 = vld [vmem:[#allocation8 + $0x130] sm:$0xff] }
  0x43   :  { %551 = vmatpush.msrb.mxu0 %v492_v38  ;;  %574 = vmatpush.msrb.mxu1 %v508_v42  ;;  %v522_v42 = vld [vmem:[#allocation8 + $0x140] sm:$0xff] }
  0x45   :  { %552 = vmatpush.msrb.mxu0 %v491_v50  ;;  %575 = vmatpush.msrb.mxu1 %v507_v51  ;;  %v502_v50 = vld [vmem:[#allocation8 + $0xa0] sm:$0xff]  ;;  %v521_v51 = vld [vmem:[#allocation8 + $0x138] sm:$0xff] }
  0x47   :  { %553 = vmatpush.msrb.mxu0 %v490_v59  ;;  %576 = vmatpush.msrb.mxu1 %v506_v0  ;;  %v501_v0 = vld [vmem:[#allocation8 + $0x98] sm:$0xff] }
  0x49   :  { %554 = vmatpush.msrb.mxu0 %v489_v11  ;;  %577 = vmatpush.msrb.mxu1 %v505_v12 }
  0xb2   :  { %v175_v7 = vpop.f32.mrf.mxu0  ;;  %v198_v8 = vpop.f32.mrf.mxu1 }
  0xb3   :  { %v912_v9 = vadd.f32 %v175_v7, %v150_v3  ;;  %v916_v10 = vadd.f32 %v198_v8, %v151_v4 }
  0xb5   :  { %v919_v13 = vmul.f32 0.70710677, %v912_v9  ;;  %v922_v14 = vmul.f32 0.70710677, %v916_v10  ;;  %v975_v6 = vmul.f32 0.5, %v912_v9 }
  0xb7   :  { %v927_v19 = vand.u32 2147483647, %v919_v13  ;;  %v930_v20 = vand.u32 2147483647, %v922_v14  ;;  %vm442_vm0 = vcmp.lt.f32.partialorder %v919_v13, 0.0  ;;  %vm443_vm1 = vcmp.lt.f32.partialorder %v922_v14, 0.0 }
  0xb9   :  { %v274_v24 = vmul.f32 0.3275911, %v927_v19  ;;  %v275_v25 = vmul.f32 0.3275911, %v930_v20  ;;  %v221_v26 = vpop.f32.mrf.mxu2  ;;  %v244_v27 = vpop.f32.mrf.mxu3  ;;  %v394_v48 = vsub.f32 0.0, %v927_v19  ;;  %v395_v52 = vsub.f32 0.0, %v930_v20 }
  0xba   :  { %v936_v28 = vadd.f32 %v221_v26, %v152_v15  ;;  %v940_v29 = vadd.f32 %v244_v27, %v153_v16  ;;  %v178_v30 = vpop.f32.mrf.mxu0  ;;  %v201_v46 = vpop.f32.mrf.mxu1  ;;  %v504_v26 = vld [vmem:[#allocation8 + $0xb0] sm:$0xff]  ;;  %v523_v27 = vld [vmem:[#allocation8 + $0x148] sm:$0xff] }
  0xbb   :  { %v282_v34 = vadd.f32 1.0, %v274_v24  ;;  %v942_v35 = vadd.f32 1.0, %v275_v25  ;;  %v950_v41 = vadd.f32 %v178_v30, %v150_v3  ;;  %v968_v57 = vadd.f32 %v201_v46, %v151_v4  ;;  %v541_v3 = vld [vmem:[#allocation8 + $0x1d8] sm:$0xff]  ;;  %v488_v25 = vld [vmem:[#allocation8 + $0x30] sm:$0xff]  ;;  %578 = vmatpush.msrb.mxu1 %v504_v26  ;;  %v486_v46 = vld [vmem:[#allocation8 + $0x20] sm:$0xff] }
  0xbc   :  { %v945_v39 = vmul.f32 0.70710677, %v936_v28  ;;  %v948_v40 = vmul.f32 0.70710677, %v940_v29  ;;  %v402_v4 = vmul.f32 %v394_v48, %v927_v19  ;;  %v403_v21 = vmul.f32 %v395_v52, %v930_v20  ;;  %619 = vmatpush.msrb.mxu3 %v541_v3  ;;  %v524_v19 = vld [vmem:[#allocation8 + $0x150] sm:$0xff]  ;;  %555 = vmatpush.msrb.mxu0 %v488_v25 }
  0xbd   :  { %691 = vrcp.f32 %v282_v34  ;;  %v959_v49 = vmul.f32 0.70710677, %v950_v41  ;;  %v985_v9 = vmul.f32 0.70710677, %v968_v57  ;;  %597 = vmatpush.msrb.mxu2 %v524_v19  ;;  %579 = vmatpush.msrb.mxu1 %v503_v36  ;;  %v534_v36 = vld [vmem:[#allocation8 + $0x1a0] sm:$0xff] }
  0xbe   :  { %693 = vrcp.f32 %v942_v35  ;;  %v268_v44 = vand.u32 2147483647, %v945_v39  ;;  %v955_v45 = vand.u32 2147483647, %v948_v40  ;;  %620 = vmatpush.msrb.mxu3 %v540_v22  ;;  %v410_v37 = vmul.f32 1.442695, %v402_v4 }
  0xbf   :  { %v964_v56 = vand.u32 2147483647, %v959_v49  ;;  %v999_v32 = vand.u32 2147483647, %v985_v9  ;;  %598 = vmatpush.msrb.mxu2 %v523_v27  ;;  %v412_v47 = vmul.f32 1.442695, %v403_v21  ;;  %580 = vmatpush.msrb.mxu1 %v502_v50 }
  0xc0   :  { %v276_v53 = vmul.f32 0.3275911, %v268_v44  ;;  %v277_v54 = vmul.f32 0.3275911, %v955_v45  ;;  %v396_v61 = vsub.f32 0.0, %v268_v44  ;;  %v397_v7 = vsub.f32 0.0, %v955_v45 }
  0xc1   :  { %v224_v63 = vpop.f32.mrf.mxu2  ;;  %v278_v8 = vmul.f32 0.3275911, %v964_v56  ;;  %v247_v33 = vpop.f32.mrf.mxu3  ;;  %v398_v38 = vsub.f32 0.0, %v964_v56  ;;  %v279_v48 = vmul.f32 0.3275911, %v999_v32  ;;  %599 = vmatpush.msrb.mxu2 %v522_v42  ;;  %581 = vmatpush.msrb.mxu1 %v501_v0  ;;  %vm444_vm2 = vcmp.lt.f32.partialorder %v945_v39, 0.0 }
  0xc2   :  { %v970_v60 = vadd.f32 1.0, %v276_v53  ;;  %v972_v62 = vadd.f32 1.0, %v277_v54  ;;  %v996_v20 = vadd.f32 %v224_v63, %v152_v15  ;;  %v404_v31 = vmul.f32 %v396_v61, %v268_v44 }
  0xc3   :  { %v692_v5 = vpop.eup %691  ;;  %v992_v24 = vadd.f32 1.0, %v278_v8  ;;  %v405_v15 = vmul.f32 %v397_v7, %v955_v45  ;;  %v1008_v45 = vmul.f32 0.5, %v916_v10  ;;  %v1016_v54 = vadd.f32 %v247_v33, %v153_v16  ;;  %600 = vmatpush.msrb.mxu2 %v521_v51  ;;  %v536_v7 = vld [vmem:[#allocation8 + $0x1b0] sm:$0xff] }
  0xc4   :  { %v980_v17 = vpop.eup %693  ;;  %v298_v18 = vmul.f32 %v692_v5, %v282_v34  ;;  %695 = vrcp.f32 %v970_v60  ;;  %v539_v34 = vld [vmem:[#allocation8 + $0x1c8] sm:$0xff]  ;;  %v1012_v53 = vmul.f32 0.70710677, %v996_v20  ;;  %v414_v61 = vmul.f32 1.442695, %v404_v31  ;;  %v484_v8 = vld [vmem:[#allocation8 + $0x10] sm:$0xff] }
  0xc5   :  { %v989_v23 = vmul.f32 %v980_v17, %v942_v35  ;;  %697 = vrcp.f32 %v972_v62  ;;  %v487_v35 = vld [vmem:[#allocation8 + $0x28] sm:$0xff]  ;;  %621 = vmatpush.msrb.mxu3 %v539_v34  ;;  %v1018_v63 = vadd.f32 1.0, %v279_v48  ;;  %v399_v10 = vsub.f32 0.0, %v999_v32  ;;  %601 = vmatpush.msrb.mxu2 %v520_v1 }
  0xc6   :  { %v306_v30 = vsub.f32 2.0, %v298_v18  ;;  %699 = vrcp.f32 %v992_v24  ;;  %556 = vmatpush.msrb.mxu0 %v487_v35  ;;  %v416_v2 = vmul.f32 1.442695, %v405_v15  ;;  %v406_v16 = vmul.f32 %v398_v38, %v964_v56  ;;  %v519_v18 = vld [vmem:[#allocation8 + $0x128] sm:$0xff] }
  0xc7   :  { %v307_v52 = vsub.f32 2.0, %v989_v23  ;;  %622 = vmatpush.msrb.mxu3 %v538_v43  ;;  %v1024_v4 = vand.u32 2147483647, %v1012_v53  ;;  %701 = vrcp.f32 %v1018_v63  ;;  %v1029_v12 = vmul.f32 0.70710677, %v1016_v54  ;;  %v483_v23 = vld [vmem:[#allocation8 + $0x8] sm:$0xff]  ;;  %602 = vmatpush.msrb.mxu2 %v519_v18 }
  0xc8   :  { %v1003_v44 = vmul.f32 %v692_v5, %v306_v30  ;;  %557 = vmatpush.msrb.mxu0 %v486_v46  ;;  %703 = vpow2.f32 %v410_v37  ;;  %v407_v27 = vmul.f32 %v399_v10, %v999_v32  ;;  %v499_v31 = vld [vmem:[#allocation8 + $0x88] sm:$0xff]  ;;  %v1041_v33 = vmul.f32 0.5, %v936_v28  ;;  %v482_v37 = vld [vmem:[#allocation8] sm:$0xff]  ;;  %v517_v43 = vld [vmem:[#allocation8 + $0x118] sm:$0xff] }
  0xc9   :  { %623 = vmatpush.msrb.mxu3 %v537_v55  ;;  %v1033_v21 = vmul.f32 %v980_v17, %v307_v52  ;;  %v280_v22 = vmul.f32 0.3275911, %v1024_v4  ;;  %705 = vpow2.f32 %v412_v47  ;;  %v1038_v30 = vand.u32 2147483647, %v1029_v12  ;;  %v518_v17 = vld [vmem:[#allocation8 + $0x120] sm:$0xff] }
  0xca   :  { %v696_v59 = vpop.eup %695  ;;  %558 = vmatpush.msrb.mxu0 %v485_v58  ;;  %v322_v56 = vmul.f32 1.0614054, %v1003_v44  ;;  %707 = vpow2.f32 %v414_v61  ;;  %v418_v38 = vmul.f32 1.442695, %v406_v16  ;;  %v498_v28 = vld [vmem:[#allocation8 + $0x80] sm:$0xff]  ;;  %603 = vmatpush.msrb.mxu2 %v518_v17  ;;  %v400_v52 = vsub.f32 0.0, %v1024_v4 }
  0xcb   :  { %v698_v3 = vpop.eup %697  ;;  %v300_v5 = vmul.f32 %v696_v59, %v970_v60  ;;  %v500_v60 = vld [vmem:[#allocation8 + $0x90] sm:$0xff]  ;;  %624 = vmatpush.msrb.mxu3 %v536_v7  ;;  %v1044_v35 = vadd.f32 1.0, %v280_v22  ;;  %v281_v42 = vmul.f32 0.3275911, %v1038_v30  ;;  %v323_v48 = vmul.f32 1.0614054, %v1033_v21 }
  0xcc   :  { %v301_v11 = vmul.f32 %v698_v3, %v972_v62  ;;  %v535_v62 = vld [vmem:[#allocation8 + $0x1a8] sm:$0xff]  ;;  %v700_v25 = vpop.eup %699  ;;  %559 = vmatpush.msrb.mxu0 %v484_v8  ;;  %582 = vmatpush.msrb.mxu1 %v500_v60  ;;  %v330_v47 = vadd.f32 -1.4531521, %v322_v56  ;;  %v420_v51 = vmul.f32 1.442695, %v407_v27  ;;  %v516_v58 = vld [vmem:[#allocation8 + $0x110] sm:$0xff] }
  0xcd   :  { %v308_v19 = vsub.f32 2.0, %v300_v5  ;;  %v302_v34 = vmul.f32 %v700_v25, %v992_v24  ;;  %625 = vmatpush.msrb.mxu3 %v535_v62  ;;  %709 = vrcp.f32 %v1044_v35  ;;  %v533_v24 = vld [vmem:[#allocation8 + $0x198] sm:$0xff]  ;;  %v702_v50 = vpop.eup %701  ;;  %v1054_v55 = vadd.f32 1.0, %v281_v42  ;;  %604 = vmatpush.msrb.mxu2 %v517_v43  ;;  %v515_v16 = vld [vmem:[#allocation8 + $0x108] sm:$0xff]  ;;  %v530_v17 = vld [vmem:[#allocation8 + $0x180] sm:$0xff] }
  0xce   :  { %v309_v26 = vsub.f32 2.0, %v301_v11  ;;  %560 = vmatpush.msrb.mxu0 %v483_v23  ;;  %583 = vmatpush.msrb.mxu1 %v499_v31  ;;  %711 = vpow2.f32 %v416_v2  ;;  %v303_v10 = vmul.f32 %v702_v50, %v1018_v63  ;;  %v338_v0 = vmul.f32 %v330_v47, %v1003_v44  ;;  %v531_v56 = vld [vmem:[#allocation8 + $0x188] sm:$0xff] }
  0xcf   :  { %v1046_v32 = vmul.f32 %v696_v59, %v308_v19  ;;  %v310_v46 = vsub.f32 2.0, %v302_v34  ;;  %626 = vmatpush.msrb.mxu3 %v534_v36  ;;  %v1056_v59 = vpop.eup %703  ;;  %v331_v1 = vadd.f32 -1.4531521, %v323_v48  ;;  %v1065_v2 = vmul.f32 0.5, %v940_v29  ;;  %605 = vmatpush.msrb.mxu2 %v516_v58  ;;  %v514_v19 = vld [vmem:[#allocation8 + $0x100] sm:$0xff] }
  0xd0   :  { %v1048_v15 = vmul.f32 %v698_v3, %v309_v26  ;;  %561 = vmatpush.msrb.mxu0 %v482_v37  ;;  %584 = vmatpush.msrb.mxu1 %v498_v28  ;;  %v532_v3 = vld [vmem:[#allocation8 + $0x190] sm:$0xff]  ;;  %v1062_v5 = vpop.eup %705  ;;  %713 = vpow2.f32 %v418_v38  ;;  %v311_v63 = vsub.f32 2.0, %v303_v10  ;;  %v346_v60 = vadd.f32 1.4214138, %v338_v0 }
  0xd1   :  { %v1058_v61 = vmul.f32 %v700_v25, %v310_v46  ;;  %627 = vmatpush.msrb.mxu3 %v533_v24  ;;  %v324_v7 = vmul.f32 1.0614054, %v1046_v32  ;;  %v1069_v11 = vpop.eup %707  ;;  %715 = vrcp.f32 %v1054_v55  ;;  %v339_v18 = vmul.f32 %v331_v1, %v1033_v21  ;;  %606 = vmatpush.msrb.mxu2 %v515_v16 }
  0xd2   :  { %v325_v8 = vmul.f32 1.0614054, %v1048_v15  ;;  %717 = vpow2.f32 %v420_v51  ;;  %v1074_v25 = vmul.f32 %v702_v50, %v311_v63  ;;  %v408_v26 = vmul.f32 %v400_v52, %v1024_v4 }
  0xd3   :  { %628 = vmatpush.msrb.mxu3 %v532_v3  ;;  %v332_v29 = vadd.f32 -1.4531521, %v324_v7  ;;  %v326_v62 = vmul.f32 1.0614054, %v1058_v61  ;;  %v710_v23 = vpop.eup %709  ;;  %v354_v27 = vmul.f32 %v346_v60, %v1003_v44  ;;  %v347_v31 = vadd.f32 1.4214138, %v339_v18  ;;  %607 = vmatpush.msrb.mxu2 %v514_v19 }
  0xd4   :  { %v333_v22 = vadd.f32 -1.4531521, %v325_v8  ;;  %v1078_v34 = vpop.eup %711  ;;  %v304_v36 = vmul.f32 %v710_v23, %v1044_v35  ;;  %v401_v28 = vsub.f32 0.0, %v1038_v30  ;;  %v327_v46 = vmul.f32 1.0614054, %v1074_v25 }
  0xd5   :  { %629 = vmatpush.msrb.mxu3 %v531_v56  ;;  %v340_v37 = vmul.f32 %v332_v29, %v1046_v32  ;;  %v334_v42 = vadd.f32 -1.4531521, %v326_v62  ;;  %v362_v43 = vadd.f32 -0.28449672, %v354_v27  ;;  %v355_v4 = vmul.f32 %v347_v31, %v1033_v21 }
  0xd6   :  { %v341_v38 = vmul.f32 %v333_v22, %v1048_v15  ;;  %v1086_v24 = vpop.eup %713  ;;  %v312_v47 = vsub.f32 2.0, %v304_v36  ;;  %v422_v52 = vmul.f32 1.442695, %v408_v26  ;;  %v335_v0 = vadd.f32 -1.4531521, %v327_v46 }
  0xd7   :  { %630 = vmatpush.msrb.mxu3 %v530_v17  ;;  %v348_v48 = vadd.f32 1.4214138, %v340_v37  ;;  %v342_v50 = vmul.f32 %v334_v42, %v1058_v61  ;;  %v716_v51 = vpop.eup %715  ;;  %v370_v58 = vmul.f32 %v362_v43, %v1003_v44  ;;  %v363_v10 = vadd.f32 -0.28449672, %v355_v4 }
  0xd8   :  { %v349_v35 = vadd.f32 1.4214138, %v341_v38  ;;  %v1090_v1 = vpop.eup %717  ;;  %v1092_v3 = vmul.f32 %v710_v23, %v312_v47  ;;  %v305_v16 = vmul.f32 %v716_v51, %v1054_v55  ;;  %v343_v56 = vmul.f32 %v335_v0, %v1074_v25 }
  0xd9   :  { %v356_v7 = vmul.f32 %v348_v48, %v1046_v32  ;;  %v378_v63 = vadd.f32 0.2548296, %v370_v58  ;;  %v371_v60 = vmul.f32 %v363_v10, %v1033_v21  ;;  %v350_v18 = vadd.f32 1.4214138, %v342_v50 }
  0xda   :  { %v357_v8 = vmul.f32 %v349_v35, %v1048_v15  ;;  %v313_v19 = vsub.f32 2.0, %v305_v16  ;;  %v409_v29 = vmul.f32 %v401_v28, %v1038_v30  ;;  %v351_v27 = vadd.f32 1.4214138, %v343_v56 }
  0xdb   :  { %v364_v22 = vadd.f32 -0.28449672, %v356_v7  ;;  %v386_v23 = vmul.f32 %v378_v63, %v1003_v44  ;;  %v379_v55 = vadd.f32 0.2548296, %v371_v60  ;;  %v358_v26 = vmul.f32 %v350_v18, %v1058_v61 }
  0xdc   :  { %v365_v62 = vadd.f32 -0.28449672, %v357_v8  ;;  %v1104_v31 = vmul.f32 %v716_v51, %v313_v19  ;;  %v328_v37 = vmul.f32 1.0614054, %v1092_v3  ;;  %v359_v44 = vmul.f32 %v351_v27, %v1074_v25 }
  0xdd   :  { %v372_v17 = vmul.f32 %v364_v22, %v1046_v32  ;;  %v426_v30 = vmul.f32 %v1056_v59, %v386_v23  ;;  %v387_v38 = vmul.f32 %v379_v55, %v1033_v21  ;;  %v366_v42 = vadd.f32 -0.28449672, %v358_v26 }
  0xde   :  { %v373_v36 = vmul.f32 %v365_v62, %v1048_v15  ;;  %719 = vpow2.f32 %v422_v52  ;;  %v336_v4 = vadd.f32 -1.4531521, %v328_v37  ;;  %vm445_vm3 = vcmp.lt.f32.partialorder %v948_v40, 0.0 }
  0xdf   :  { %v380_v28 = vadd.f32 0.2548296, %v372_v17  ;;  %v434_v46 = vsub.f32 1.0, %v426_v30  ;;  %v427_v47 = vmul.f32 %v1062_v5, %v387_v38  ;;  %v374_v48 = vmul.f32 %v366_v42, %v1058_v61 }
  0xe0   :  { %v381_v43 = vadd.f32 0.2548296, %v373_v36  ;;  %v367_v35 = vadd.f32 -0.28449672, %v359_v44  ;;  %v344_v50 = vmul.f32 %v336_v4, %v1092_v3  ;;  %v329_v51 = vmul.f32 1.0614054, %v1104_v31 }
  0xe1   :  { %v388_v59 = vmul.f32 %v380_v28, %v1046_v32  ;;  %v450_v52 = vsub.f32 0.0, %v434_v46  ;;  %v435_v58 = vsub.f32 1.0, %v427_v47  ;;  %v382_v10 = vadd.f32 0.2548296, %v374_v48 }
  0xe2   :  { %v389_v21 = vmul.f32 %v381_v43, %v1048_v15  ;;  %v375_v0 = vmul.f32 %v367_v35, %v1074_v25  ;;  %v352_v7 = vadd.f32 1.4214138, %v344_v50  ;;  %v337_v8 = vadd.f32 -1.4531521, %v329_v51 }
  0xe3   :  { %v428_v16 = vmul.f32 %v1069_v11, %v388_v59  ;;  %v458_v32 = vsel %vm442_vm0, %v450_v52, %v434_v46  ;;  %v451_v63 = vsub.f32 0.0, %v435_v58  ;;  %v390_v15 = vmul.f32 %v382_v10, %v1058_v61 }
  0xe4   :  { %v429_v5 = vmul.f32 %v1078_v34, %v389_v21  ;;  %v383_v60 = vadd.f32 0.2548296, %v375_v0  ;;  %v720_v18 = vpop.eup %719  ;;  %v466_v56 = vadd.f32 1.0, %v458_v32  ;;  %v360_v62 = vmul.f32 %v352_v7, %v1092_v3 }
  0xe5   :  { %v436_v19 = vsub.f32 1.0, %v428_v16  ;;  %v459_v11 = vsel %vm443_vm1, %v451_v63, %v435_v58  ;;  %v430_v34 = vmul.f32 %v1086_v24, %v390_v15  ;;  %v345_v13 = vmul.f32 %v337_v8, %v1104_v31 }
  0xe6   :  { %v437_v22 = vsub.f32 1.0, %v429_v5  ;;  %v391_v23 = vmul.f32 %v383_v60, %v1074_v25  ;;  %v474_v55 = vmul.f32 %v466_v56, %v975_v6  ;;  %v467_v26 = vadd.f32 1.0, %v459_v11 }
  0xe7   :  { %v452_v61 = vsub.f32 0.0, %v436_v19  ;;  %v438_v17 = vsub.f32 1.0, %v430_v34  ;;  %v368_v37 = vadd.f32 -0.28449672, %v360_v62  ;;  %v353_v30 = vadd.f32 1.4214138, %v345_v13 }
  0xe8   :  { %v453_v27 = vsub.f32 0.0, %v437_v22  ;;  %v431_v36 = vmul.f32 %v1090_v1, %v391_v23  ;;  %v424_v38 = vmul.f32 1.442695, %v409_v29  ;;  %562 = vmatmul.f32.vlgmr.msrb.gmra.mxu0 %v474_v55  ;;  %v475_v14 = vmul.f32 %v467_v26, %v1008_v45 }
  0xe9   :  { %v460_v24 = vsel %vm444_vm2, %v452_v61, %v436_v19  ;;  %v454_v44 = vsub.f32 0.0, %v438_v17  ;;  %v254_v43 = vmul.f32 0.5, %v950_v41  ;;  %vm446_vm4 = vcmp.lt.f32.partialorder %v959_v49, 0.0 }
  0xea   :  { %v461_v25 = vsel %vm445_vm3, %v453_v27, %v437_v22  ;;  %v468_v42 = vadd.f32 1.0, %v460_v24  ;;  %v439_v28 = vsub.f32 1.0, %v431_v36  ;;  %585 = vmatmul.f32.vlgmr.msrb.gmra.mxu1 %v475_v14  ;;  %v376_v1 = vmul.f32 %v368_v37, %v1092_v3 }
  0xeb   :  { %v469_v6 = vadd.f32 1.0, %v461_v25  ;;  %v361_v29 = vmul.f32 %v353_v30, %v1104_v31  ;;  %v462_v4 = vsel %vm446_vm4, %v454_v44, %v438_v17  ;;  %vm447_vm5 = vcmp.lt.f32.partialorder %v985_v9, 0.0 }
  0xec   :  { %v476_v45 = vmul.f32 %v468_v42, %v1041_v33  ;;  %v455_v40 = vsub.f32 0.0, %v439_v28  ;;  %v470_v46 = vadd.f32 1.0, %v462_v4  ;;  %v384_v47 = vadd.f32 0.2548296, %v376_v1 }
  0xed   :  { %v477_v39 = vmul.f32 %v469_v6, %v1065_v2  ;;  %v369_v48 = vadd.f32 -0.28449672, %v361_v29  ;;  %v255_v41 = vmul.f32 0.5, %v968_v57  ;;  %721 = vpow2.f32 %v424_v38 }
  0xee   :  { %608 = vmatmul.f32.vlgmr.msrb.gmra.mxu2 %v476_v45  ;;  %v463_v49 = vsel %vm447_vm5, %v455_v40, %v439_v28  ;;  %v478_v35 = vmul.f32 %v470_v46, %v254_v43  ;;  %v392_v21 = vmul.f32 %v384_v47, %v1092_v3  ;;  %vm448_vm6 = vcmp.lt.f32.partialorder %v1012_v53, 0.0 }
  0xef   :  { %631 = vmatmul.f32.vlgmr.msrb.gmra.mxu3 %v477_v39  ;;  %v471_v59 = vadd.f32 1.0, %v463_v49  ;;  %v377_v33 = vmul.f32 %v369_v48, %v1104_v31  ;;  %v256_v5 = vmul.f32 0.5, %v996_v20  ;;  %vm449_vm7 = vcmp.lt.f32.partialorder %v1029_v12, 0.0  ;;  %v690_v20 = vld [vmem:[%s1167_s4] ss:$0 sm:$0xff] }
  0xf0   :  { %565 = vmatmul.f32.gmra.mxu0 %v478_v35  ;;  %v432_v50 = vmul.f32 %v720_v18, %v392_v21  ;;  %v257_v63 = vmul.f32 0.5, %v1016_v54 }
  0xf1   :  { %v479_v2 = vmul.f32 %v471_v59, %v255_v41  ;;  %v385_v51 = vadd.f32 0.2548296, %v377_v33 }
  0xf2   :  { %v440_v9 = vsub.f32 1.0, %v432_v50 }
  0xf3   :  { %588 = vmatmul.f32.gmra.mxu1 %v479_v2  ;;  %v393_v52 = vmul.f32 %v385_v51, %v1104_v31  ;;  %v722_v58 = vpop.eup %721 }
  0xf4   :  { %v456_v57 = vsub.f32 0.0, %v440_v9 }
  0xf5   :  { %v433_v10 = vmul.f32 %v722_v58, %v393_v52 }
  0xf6   :  { %v464_v0 = vsel %vm448_vm6, %v456_v57, %v440_v9 }
  0xf7   :  { %v441_v16 = vsub.f32 1.0, %v433_v10  ;;  %v472_v3 = vadd.f32 1.0, %v464_v0 }
  0xf9   :  { %v457_v7 = vsub.f32 0.0, %v441_v16  ;;  %v480_v8 = vmul.f32 %v472_v3, %v256_v5 }
  0xfb   :  { %v465_v32 = vsel %vm449_vm7, %v457_v7, %v441_v16  ;;  %611 = vmatmul.f32.gmra.mxu2 %v480_v8 }
  0xfc   :  { %v473_v15 = vadd.f32 1.0, %v465_v32 }
  0xfe   :  { %v481_v31 = vmul.f32 %v473_v15, %v257_v63 }
 0x100   :  { %634 = vmatmul.f32.gmra.mxu3 %v481_v31 }
 0x165   :  { %v563_v60 = vpop.f32.mrf.mxu0 }
 0x167   :  { %v586_v18 = vpop.f32.mrf.mxu1 }
 0x168   :  { %v587_v56 = vadd.f32 %v586_v18, %v563_v60 }
 0x16d   :  { %v566_v11 = vpop.f32.mrf.mxu0 }
 0x170   :  { %v589_v34 = vpop.f32.mrf.mxu1 }
 0x171   :  { %v609_v53 = vpop.f32.mrf.mxu2  ;;  %v590_v54 = vadd.f32 %v589_v34, %v566_v11 }
 0x172   :  { %v610_v19 = vadd.f32 %v609_v53, %v587_v56  ;;  %v632_v22 = vpop.f32.mrf.mxu3 }
 0x174   :  { %v633_v62 = vadd.f32 %v632_v22, %v610_v19 }
 0x176   :  { %v646_v12 = vadd.f32 %v690_v20, %v633_v62 }
 0x178   :  { %648 = vst [vmem:[#allocation10] sm:$0xff] %v646_v12 }
 0x17e   :  { %v612_v23 = vpop.f32.mrf.mxu2 }
 0x17f   :  { %v613_v13 = vadd.f32 %v612_v23, %v590_v54 }
 0x183   :  { %v635_v55 = vpop.f32.mrf.mxu3 }
 0x184   :  { %v636_v26 = vadd.f32 %v635_v55, %v613_v13 }
 0x186   :  { %v647_v61 = vadd.f32 %v690_v20, %v636_v26 }
 0x188   :  { %649 = vst [vmem:[#allocation10 + $0x8] sm:$0xff] %v647_v61 }
 0x189   :  { %672 = dma.vmem_to_hbm [thread:$0]  %s665_s16, 256, %s667_s19, [#allocation4], %s855_s30, %s855_s30, %s856_s6  }
 0x18a   :  { %849 = dma.done.wait [#allocation4], 256  }
 0x18b   :  { %850 = vsyncadd [#allocation4], 4294967040 }
 0x18c   :  { %677 = vsyncpa [#allocation3], 1 }
 0x18d   :  { %678 = vsyncpa [#allocation6], 1 }
 0x18e   :  { %679 = vsyncpa [#allocation9], 1 }
 0x18f   :  { %680 = vsyncpa [#allocation4], 1 }

</bundles_post_ra>
